<compile_context>
chip_gen: v7x
topology: tpu7x:2x2x1
jax: 0.10.0
libtpu: 0.0.40
codegen_flags: <defaults>
</compile_context>

<pallas_src>
import functools

import jax
import jax.numpy as jnp
from jax.experimental import pallas as pl
from jax.experimental.pallas import tpu as pltpu


def _round_up(n, m):
    return pl.cdiv(n, m) * m


def _tpu_vmem_bytes():
    try:
        return int(pltpu.get_tpu_info().vmem_capacity_bytes)
    except Exception:
        return 64 * 1024 * 1024          # conservative (v7x-sized) fallback


def _mlp_kernel(x_ref, w1_ref, b1_ref, w2_ref, b2_ref, out_ref, *, n_classes):
    """One batch tile: two bf16 matmuls (f32 accum) + ReLU + fused logsumexp.

    Output tile layout (f32, lane-dense [TM, C_pad]):
      columns [0, n_classes)  : logits
      column  n_classes       : row-wise logsumexp over the real classes
      remaining pad columns   : 0
    """
    x = x_ref[...].astype(jnp.bfloat16)                                  # cast in-kernel
    # Linear 1 + ReLU (bias add / ReLU stay in f32).
    h = jnp.dot(x, w1_ref[...], preferred_element_type=jnp.float32)      # [TM, H] f32
    h = jnp.maximum(h + b1_ref[...], 0.0)
    # Linear 2 (class dim zero-padded to a lane-dense multiple of 128 in the wrapper).
    logits = jnp.dot(h.astype(w2_ref.dtype), w2_ref[...],
                     preferred_element_type=jnp.float32)                 # [TM, Cp] f32
    logits = logits + b2_ref[...]

    # Fused log-sum-exp over the *real* classes only (pad columns -> -inf).
    col = jax.lax.broadcasted_iota(jnp.int32, logits.shape, 1)
    valid = col < n_classes
    masked = jnp.where(valid, logits, jnp.float32(-jnp.inf))
    row_max = jnp.max(masked, axis=-1, keepdims=True)                    # [TM, 1]
    lse = row_max + jnp.log(jnp.sum(jnp.exp(masked - row_max), axis=-1, keepdims=True))

    # Pack: real logits in cols < C, lse in pad column C, zeros elsewhere.
    out_ref[...] = jnp.where(valid, logits,
                             jnp.where(col == n_classes, lse, jnp.float32(0.0)))


def prepare_mlp_params(w1, b1, w2, b2):
    """One-time bf16 cast + class-dim padding of the static weights (hoisted out of the
    per-call path).  Class dim is padded to a lane-dense multiple of 128, reserving one
    extra column for the packed logsumexp."""
    D, H = w1.shape
    C = w2.shape[1]
    C_pad = _round_up(C + 1, 128)          # +1 reserves the lse pad column
    return {
        "w1": w1.astype(jnp.bfloat16),                                        # [D, H]
        "b1": b1.reshape(1, H).astype(jnp.float32),                           # [1, H]
        "w2": jnp.pad(w2, ((0, 0), (0, C_pad - C))).astype(jnp.bfloat16),     # [H, Cp]
        "b2": jnp.pad(b2.reshape(1, C).astype(jnp.float32),
                      ((0, 0), (0, C_pad - C))),                              # [1, Cp]
    }


def mlp_classifier_forward(embeddings, params, labels=None, mask=None,
                           class_weights=None, *, n_classes, block_m=None):
    """Pallas kernel for logits + packed logsumexp; argmax / masked weighted-CE glue
    runs on the tiny [N, C] slice in JAX."""
    N, D = embeddings.shape
    H = params["w1"].shape[1]
    C_pad = params["w2"].shape[1]
    C = n_classes
    assert C < C_pad, "use prepare_mlp_params (it reserves the lse pad column)"

    phys = _tpu_vmem_bytes()
    depth = 2 if phys <= 80 * 1024 * 1024 else 3     # shallower x buffering on 64 MiB v7x
    if block_m is None:
        block_m = 1024 if phys >= 100 * 1024 * 1024 else 512

    # Batch tile: multiple of 16 (bf16 sublane packing); cap so the grid has >= 2 steps
    # where possible so ("parallel",) can shard the batch axis across both v7x TCs.
    TM = max(16, min(block_m, _round_up(pl.cdiv(N, 2), 16)))

    def est_vmem(tm):
        return (depth * tm * D * 4                   # streamed f32 x tiles
                + (D * H + H * C_pad) * 2            # resident bf16 weights (Buffered(1))
                + 8 * (H + C_pad) * 4                # biases (sublane-padded rows)
                + 2 * tm * C_pad * 4)                # double-buffered output tiles

    budget = max(int(phys * 0.45), 8 * 1024 * 1024)
    while TM > 16 and est_vmem(TM) > budget:
        TM = max(16, _round_up(TM // 2, 16))

    N_pad = _round_up(N, TM)
    x = embeddings
    if N_pad != N:
        x = jnp.pad(x, ((0, N_pad - N), (0, 0)))

    grid = (N_pad // TM,)
    vmem = pltpu.MemorySpace.VMEM
    vmem_limit = int(min(max(2 * est_vmem(TM), 16 * 1024 * 1024), phys * 7 // 8))

    cost = pl.CostEstimate(
        flops=2 * N_pad * (D * H + H * C_pad),
        transcendentals=N_pad * (C_pad + 1),
        bytes_accessed=(N_pad * D * 4 + D * H * 2 + H * C_pad * 2
                        + (H + C_pad) * 4 + N_pad * C_pad * 4),
    )

    out_pad = pl.pallas_call(
        functools.partial(_mlp_kernel, n_classes=C),
        grid=grid,
        in_specs=[
            pl.BlockSpec((TM, D), lambda i: (i, 0), memory_space=vmem,
                         pipeline_mode=pl.Buffered(depth)),
            pl.BlockSpec((D, H), lambda i: (0, 0), memory_space=vmem,
                         pipeline_mode=pl.Buffered(1)),
            pl.BlockSpec((1, H), lambda i: (0, 0), memory_space=vmem,
                         pipeline_mode=pl.Buffered(1)),
            pl.BlockSpec((H, C_pad), lambda i: (0, 0), memory_space=vmem,
                         pipeline_mode=pl.Buffered(1)),
            pl.BlockSpec((1, C_pad), lambda i: (0, 0), memory_space=vmem,
                         pipeline_mode=pl.Buffered(1)),
        ],
        out_specs=pl.BlockSpec((TM, C_pad), lambda i: (i, 0), memory_space=vmem),
        out_shape=jax.ShapeDtypeStruct((N_pad, C_pad), jnp.float32),
        compiler_params=pltpu.CompilerParams(
            dimension_semantics=("parallel",),
            vmem_limit_bytes=vmem_limit,
        ),
        cost_estimate=cost,
    )(x, params["w1"], params["b1"], params["w2"], params["b2"])

    logits = out_pad[:N, :C]
    lse = out_pad[:N, C]
    preds = jnp.argmax(logits, axis=-1).astype(jnp.int32)

    # Masked, class-weighted cross-entropy (reduction='mean' with weight normalization).
    loss = jnp.float32(0.0)
    if labels is not None:
        if mask is None:
            mask = jnp.ones((N,), dtype=bool)
        # NOTE: take_along_axis clamps out-of-range labels (torch would raise); such rows
        # are expected to be masked out.
        gold = jnp.take_along_axis(logits, labels[:, None], axis=-1)[:, 0]   # [N]
        nll = lse - gold                                                     # [N]
        if class_weights is not None:
            w = jnp.asarray(class_weights, dtype=jnp.float32)[labels]
        else:
            w = jnp.ones((N,), dtype=jnp.float32)
        wm = w * mask.astype(jnp.float32)
        denom = jnp.sum(wm)
        # Guard all-masked / zero-weight batches (torch CrossEntropyLoss would give NaN).
        loss = jnp.where(denom > 0,
                         jnp.sum(nll * wm) / jnp.maximum(denom, jnp.float32(1e-30)),
                         jnp.float32(0.0))

    return {"preds": preds, "loss": loss, "logits": logits}


if __name__ == "__main__":
    # Small shapes consistent with the module: batch N=8, input=32, hidden=32, classes=4.
    N, D, H, C = 8, 32, 32, 4

    key = jax.random.PRNGKey(0)
    k_x, k_w1, k_b1, k_w2, k_b2, k_lab = jax.random.split(key, 6)

    embeddings = jax.random.normal(k_x, (N, D), dtype=jnp.float32)
    # Linear weights stored already-transposed as [in, out] (== PyTorch x @ W.T + b).
    w1 = jax.random.normal(k_w1, (D, H), dtype=jnp.float32) * 0.1
    b1 = jax.random.normal(k_b1, (H,), dtype=jnp.float32) * 0.1
    w2 = jax.random.normal(k_w2, (H, C), dtype=jnp.float32) * 0.1
    b2 = jax.random.normal(k_b2, (C,), dtype=jnp.float32) * 0.1

    labels = jax.random.randint(k_lab, (N,), 0, C, dtype=jnp.int32)
    mask = jnp.array([True, True, False, True, True, True, False, True])
    class_weights = jnp.array([1.0, 2.0, 0.5, 1.0], dtype=jnp.float32)

    # Hoisted one-time weight prep (bf16 cast + class-dim padding).
    params = prepare_mlp_params(w1, b1, w2, b2)

    fwd = jax.jit(mlp_classifier_forward, static_argnames=("n_classes", "block_m"))
    out = fwd(embeddings, params, labels, mask, class_weights, n_classes=C)
    jax.block_until_ready(out)

    # Plain-JAX reference with the same bf16-matmul / f32-accumulate recipe.
    # (Intentional divergence from torch's f32 matmuls; tolerances sized for small D/H.)
    h_ref = jnp.dot(embeddings.astype(jnp.bfloat16), w1.astype(jnp.bfloat16),
                    preferred_element_type=jnp.float32) + b1
    h_ref = jnp.maximum(h_ref, 0.0)
    ref_logits = jnp.dot(h_ref.astype(jnp.bfloat16), w2.astype(jnp.bfloat16),
                         preferred_element_type=jnp.float32) + b2
    ref_preds = jnp.argmax(ref_logits, axis=-1).astype(jnp.int32)
    ref_lse = jax.scipy.special.logsumexp(ref_logits, axis=-1)
    ref_gold = jnp.take_along_axis(ref_logits, labels[:, None], axis=-1)[:, 0]
    ref_wm = class_weights[labels] * mask.astype(jnp.float32)
    ref_loss = jnp.sum((ref_lse - ref_gold) * ref_wm) / jnp.sum(ref_wm)

    assert jnp.allclose(out["logits"], ref_logits, atol=5e-3, rtol=5e-3), "logits mismatch"
    assert jnp.array_equal(out["preds"], ref_preds), "preds mismatch"
    assert jnp.isfinite(out["loss"]), "loss not finite"
    assert jnp.allclose(out["loss"], ref_loss, atol=5e-3, rtol=5e-3), "loss mismatch"

    print("KERNEL_OK")
</pallas_src>

<mosaic_0001>
module attributes {stable_mosaic.version = 11 : i64} {
  func.func @_mlp_kernel(%arg0: i32, %arg1: memref<16x32xf32, #tpu.memory_space<vmem>>, %arg2: memref<32x32xbf16, #tpu.memory_space<vmem>>, %arg3: memref<1x32xf32, #tpu.memory_space<vmem>>, %arg4: memref<32x128xbf16, #tpu.memory_space<vmem>>, %arg5: memref<1x128xf32, #tpu.memory_space<vmem>>, %arg6: memref<16x128xf32, #tpu.memory_space<vmem>>) attributes {dimension_semantics = [#tpu.dimension_semantics<parallel>], iteration_bounds = array<i64: 1>, scalar_prefetch = 0 : i64, scratch_operands = 0 : i64, tpu.core_type = #tpu.core_type<tc>, window_params = [{pipeline_mode = #tpu.pipeline_mode<double_buffered>, transform_indices = @transform_0, window_bounds = array<i64: 16, 32>}, {pipeline_mode = #tpu.pipeline_mode<synchronous>, transform_indices = @transform_1, window_bounds = array<i64: 32, 32>}, {pipeline_mode = #tpu.pipeline_mode<synchronous>, transform_indices = @transform_2, window_bounds = array<i64: 1, 32>}, {pipeline_mode = #tpu.pipeline_mode<synchronous>, transform_indices = @transform_3, window_bounds = array<i64: 32, 128>}, {pipeline_mode = #tpu.pipeline_mode<synchronous>, transform_indices = @transform_4, window_bounds = array<i64: 1, 128>}, {transform_indices = @transform_5, window_bounds = array<i64: 16, 128>}]} {
    %c0 = arith.constant 0 : index
    %c0_0 = arith.constant 0 : index
    %0 = vector.load %arg1[%c0, %c0_0] : memref<16x32xf32, #tpu.memory_space<vmem>>, vector<16x32xf32>
    %1 = arith.truncf %0 : vector<16x32xf32> to vector<16x32xbf16>
    %c0_1 = arith.constant 0 : index
    %c0_2 = arith.constant 0 : index
    %2 = vector.load %arg2[%c0_1, %c0_2] : memref<32x32xbf16, #tpu.memory_space<vmem>>, vector<32x32xbf16>
    %cst = arith.constant dense<0.000000e+00> : vector<16x32xf32>
    %3 = tpu.matmul %1, %2, %cst {dimension_numbers = #tpu.dot_dimension_numbers<[1], [0], [0], [1], [0, 0, 1, 1], [], []>} : vector<16x32xbf16>, vector<32x32xbf16>, vector<16x32xf32> -> vector<16x32xf32>
    %c0_3 = arith.constant 0 : index
    %c0_4 = arith.constant 0 : index
    %4 = vector.load %arg3[%c0_3, %c0_4] : memref<1x32xf32, #tpu.memory_space<vmem>>, vector<1x32xf32>
    %5 = vector.broadcast %4 : vector<1x32xf32> to vector<16x32xf32>
    %6 = arith.addf %3, %5 : vector<16x32xf32>
    %cst_5 = arith.constant 0.000000e+00 : f32
    %7 = vector.broadcast %cst_5 : f32 to vector<16x32xf32>
    %8 = arith.maximumf %6, %7 : vector<16x32xf32>
    %9 = arith.truncf %8 : vector<16x32xf32> to vector<16x32xbf16>
    %c0_6 = arith.constant 0 : index
    %c0_7 = arith.constant 0 : index
    %10 = vector.load %arg4[%c0_6, %c0_7] : memref<32x128xbf16, #tpu.memory_space<vmem>>, vector<32x128xbf16>
    %cst_8 = arith.constant dense<0.000000e+00> : vector<16x128xf32>
    %11 = tpu.matmul %9, %10, %cst_8 {dimension_numbers = #tpu.dot_dimension_numbers<[1], [0], [0], [1], [0, 0, 1, 1], [], []>} : vector<16x32xbf16>, vector<32x128xbf16>, vector<16x128xf32> -> vector<16x128xf32>
    %c0_9 = arith.constant 0 : index
    %c0_10 = arith.constant 0 : index
    %12 = vector.load %arg5[%c0_9, %c0_10] : memref<1x128xf32, #tpu.memory_space<vmem>>, vector<1x128xf32>
    %13 = vector.broadcast %12 : vector<1x128xf32> to vector<16x128xf32>
    %14 = arith.addf %11, %13 : vector<16x128xf32>
    %15 = tpu.iota {dimensions = array<i32: 1>} : vector<16x128xi32>
    %c4_i32 = arith.constant 4 : i32
    %16 = vector.broadcast %c4_i32 : i32 to vector<16x128xi32>
    %17 = arith.cmpi slt, %15, %16 : vector<16x128xi32>
    %cst_11 = arith.constant 0xFF800000 : f32
    %18 = vector.broadcast %cst_11 : f32 to vector<16x128xf32>
    %19 = arith.select %17, %14, %18 : vector<16x128xi1>, vector<16x128xf32>
    %cst_12 = arith.constant dense<0xFF800000> : vector<16xf32>
    %20 = vector.multi_reduction <maximumf>, %19, %cst_12 [1] : vector<16x128xf32> to vector<16xf32>
    %21 = vector.shape_cast %20 : vector<16xf32> to vector<16x1xf32>
    %22 = vector.broadcast %21 : vector<16x1xf32> to vector<16x128xf32>
    %23 = arith.subf %19, %22 : vector<16x128xf32>
    %24 = math.exp %23 : vector<16x128xf32>
    %cst_13 = arith.constant dense<0.000000e+00> : vector<16xf32>
    %25 = vector.multi_reduction <add>, %24, %cst_13 [1] : vector<16x128xf32> to vector<16xf32>
    %26 = vector.shape_cast %25 : vector<16xf32> to vector<16x1xf32>
    %27 = math.log %26 : vector<16x1xf32>
    %28 = arith.addf %21, %27 : vector<16x1xf32>
    %c4_i32_14 = arith.constant 4 : i32
    %29 = vector.broadcast %c4_i32_14 : i32 to vector<16x128xi32>
    %30 = arith.cmpi eq, %15, %29 : vector<16x128xi32>
    %cst_15 = arith.constant 0.000000e+00 : f32
    %31 = vector.shape_cast %28 : vector<16x1xf32> to vector<16x1xf32>
    %32 = vector.broadcast %31 : vector<16x1xf32> to vector<16x128xf32>
    %33 = vector.broadcast %cst_15 : f32 to vector<16x128xf32>
    %34 = arith.select %30, %32, %33 : vector<16x128xi1>, vector<16x128xf32>
    %35 = arith.select %17, %14, %34 : vector<16x128xi1>, vector<16x128xf32>
    %c0_16 = arith.constant 0 : index
    %c0_17 = arith.constant 0 : index
    %36 = vector.load %arg6[%c0_16, %c0_17] : memref<16x128xf32, #tpu.memory_space<vmem>>, vector<16x128xf32>
    tpu.vector_store %arg6[%c0_16, %c0_17], %35 {strides = array<i32>} : memref<16x128xf32, #tpu.memory_space<vmem>>, vector<16x128xf32>,
    return
  }
  func.func @transform_0(%arg0: i32) -> (i32, i32) {
    %c0_i32 = arith.constant 0 : i32
    %c0_i32_0 = arith.constant 0 : i32
    return %arg0, %c0_i32 : i32, i32
  }
  func.func @transform_1(%arg0: i32) -> (i32, i32) {
    %c0_i32 = arith.constant 0 : i32
    %c0_i32_0 = arith.constant 0 : i32
    %c0_i32_1 = arith.constant 0 : i32
    return %c0_i32, %c0_i32_0 : i32, i32
  }
  func.func @transform_2(%arg0: i32) -> (i32, i32) {
    %c0_i32 = arith.constant 0 : i32
    %c0_i32_0 = arith.constant 0 : i32
    %c0_i32_1 = arith.constant 0 : i32
    return %c0_i32, %c0_i32_0 : i32, i32
  }
  func.func @transform_3(%arg0: i32) -> (i32, i32) {
    %c0_i32 = arith.constant 0 : i32
    %c0_i32_0 = arith.constant 0 : i32
    %c0_i32_1 = arith.constant 0 : i32
    return %c0_i32, %c0_i32_0 : i32, i32
  }
  func.func @transform_4(%arg0: i32) -> (i32, i32) {
    %c0_i32 = arith.constant 0 : i32
    %c0_i32_0 = arith.constant 0 : i32
    %c0_i32_1 = arith.constant 0 : i32
    return %c0_i32, %c0_i32_0 : i32, i32
  }
  func.func @transform_5(%arg0: i32) -> (i32, i32) {
    %c0_i32 = arith.constant 0 : i32
    %c0_i32_0 = arith.constant 0 : i32
    return %arg0, %c0_i32 : i32, i32
  }
}

</mosaic_0001>

<bundles_post_ra>
// kernel: mlp_classifier_forward.1
= control target key start
LH: loop header
LB: loop body
LE: loop exit
PB: predicated region body
PF: predicated region fallthrough
CT: control target
= control target key end

     0   :  { %v242_v0 = vmov 0.0   ;;  %vm243_vm0 = vmmov 0   ;;  %vm47_vm1 = vcmask 261120   ;;  %v162_v18 = vlaneseq  ;;  %s310_s1 = inlined_call_operand.vmem [shape: bf16[32,32], index: 1, kind: input, shape index: {}]   ;;  %s311_s0 = inlined_call_operand.vmem [shape: f32[16,32], index: 0, kind: input, shape index: {}]   ;;  %s312_s3 = inlined_call_operand.vmem [shape: bf16[32,128], index: 3, kind: input, shape index: {}]   ;;  %s313_s2 = inlined_call_operand.vmem [shape: f32[1,32], index: 2, kind: input, shape index: {}]   ;;  %s314_s4 = inlined_call_operand.vmem [shape: f32[1,128], index: 4, kind: input, shape index: {}]   ;;  %s315_s5 = inlined_call_operand.vmem [shape: f32[16,128], index: 5, kind: output, shape index: {}]  }
   0x1   :  { %212 = vmatprep.subr.bf16.mxu0 %v242_v0  ;;  %v230_v1 = vld [vmem:[%s310_s1] sm:$0xff]   ;;  %216 = vmatprep.mubr.msk.bf16.mxu0 %vm243_vm0, %v242_v0  ;;  %v231_v2 = vld [vmem:[%s310_s1 + $0x8] sm:$0xff]  }
   0x2   :  { %220 = vmatprep.subr.bf16.mxu1 %v242_v0  ;;  %224 = vmatprep.mubr.msk.bf16.mxu1 %vm243_vm0, %v242_v0  ;;  %v21_v3 = vld [vmem:[%s311_s0] sm:$0xff]  ;;  %v22_v4 = vld [vmem:[%s311_s0 + $0x8] sm:$0xff]  ;;  %v163_v19 = vand.u32 127, %v162_v18 }
   0x3   :  { %213 = vmatpush3.bf16.msra.mxu0 %v230_v1  ;;  %v23_v5 = vpack.c.bf16 %v22_v4, %v21_v3  ;;  %v232_v6 = vld [vmem:[%s312_s3] sm:$0xff]   ;;  %v233_v7 = vld [vmem:[%s312_s3 + $0x8] sm:$0xff]  }
   0x4   :  { %214 = vmatprep.subr.bf16.mxu0 %v242_v0  ;;  %221 = vmatpush3.bf16.msra.mxu1 %v232_v6  ;;  %v198_v8 = vld [vmem:[%s313_s2] ss:$0 sm:$0xff]  ;;  %vm164_vm2 = vcmp.lt.s32.totalorder %v163_v19, 4  ;;  %vm187_vm3 = vcmp.eq.s32.totalorder %v163_v19, 4 }
   0x5   :  { %222 = vmatprep.subr.bf16.mxu1 %v242_v0  ;;  %v202_v20 = vld [vmem:[%s314_s4] ss:$0 sm:$0xff] }
   0x7   :  { %215 = vmatpush3.bf16.msra.mxu0 %v231_v2 }
   0x8   :  { %223 = vmatpush3.bf16.msra.mxu1 %v233_v7 }
   0xa   :  { %217 = vmatmul.mubr.msk.bf16.vlgmr.msra.gmra.mrb[0].mxu0 %vm47_vm1, %v23_v5 }
  0xdd   :  { %v85_v9 = vpop.f32.mrb[0].mxu0 }
  0xde   :  { %v86_v10 = vadd.f32 %v198_v8, %v85_v9  ;;  %v218_v11 = vpop.f32.mrb[1].mxu0 }
  0xdf   :  { %v88_v12 = vpop.f32.mrb[2].mxu0 }
  0xe0   :  { %v89_v13 = vadd.f32 %v198_v8, %v88_v12  ;;  %v219_v14 = vpop.f32.mrb[3].mxu0  ;;  %v92_v15 = vmax.f32 %v86_v10, 0.0 }
  0xe2   :  { %v93_v16 = vmax.f32 %v89_v13, 0.0 }
  0xe4   :  { %v94_v17 = vpack.c.bf16 %v93_v16, %v92_v15 }
  0xe6   :  { %225 = vmatmul.mubr.msk.bf16.vlgmr.msra.gmra.mrb[0].mxu1 %vm47_vm1, %v94_v17 }
 0x1b9   :  { %v155_v21 = vpop.f32.mrb[0].mxu1 }
 0x1ba   :  { %v156_v22 = vadd.f32 %v202_v20, %v155_v21  ;;  %v226_v23 = vpop.f32.mrb[1].mxu1 }
 0x1bb   :  { %v158_v24 = vpop.f32.mrb[2].mxu1 }
 0x1bc   :  { %v159_v25 = vadd.f32 %v202_v20, %v158_v24  ;;  %v227_v26 = vpop.f32.mrb[3].mxu1  ;;  %v165_v27 = vsel %vm164_vm2, %v156_v22, -inf }
 0x1bd   :  { %167 = vmax.xlane.f32.xlu0 %v165_v27 }
 0x1be   :  { %v166_v28 = vsel %vm164_vm2, %v159_v25, -inf }
 0x1c1   :  { %169 = vmax.xlane.f32.xlu0 %v166_v28 }
 0x24a   :  { %v168_v29 = vpop.xlane.xlu0 %167 }
 0x24b   :  { %v171_v30 = vsub.f32 %v165_v27, %v168_v29 }
 0x24d   :  { %v173_v31 = vmul.f32 1.442695, %v171_v30 }
 0x24e   :  { %v170_v32 = vpop.xlane.xlu0 %169 }
 0x24f   :  { %v172_v33 = vsub.f32 %v166_v28, %v170_v32  ;;  %234 = vpow2.f32 %v173_v31 }
 0x251   :  { %v175_v34 = vmul.f32 1.442695, %v172_v33 }
 0x253   :  { %236 = vpow2.f32 %v175_v34 }
 0x259   :  { %v235_v35 = vpop.eup %234 }
 0x25a   :  { %177 = vadd.xlane.f32.xlu1 %v235_v35 }
 0x25d   :  { %v237_v36 = vpop.eup %236 }
 0x25e   :  { %179 = vadd.xlane.f32.xlu1 %v237_v36 }
 0x2e7   :  { %v178_v37 = vpop.xlane.xlu1 %177 }
 0x2e8   :  { %238 = vlog2.f32 %v178_v37 }
 0x2eb   :  { %v180_v38 = vpop.xlane.xlu1 %179 }
 0x2ec   :  { %240 = vlog2.f32 %v180_v38 }
 0x2f2   :  { %v239_v39 = vpop.eup %238 }
 0x2f3   :  { %v182_v40 = vmul.f32 0.6931472, %v239_v39 }
 0x2f5   :  { %v185_v41 = vadd.f32 %v182_v40, %v168_v29 }
 0x2f6   :  { %v241_v42 = vpop.eup %240 }
 0x2f7   :  { %v188_v43 = vsel %vm187_vm3, %v185_v41, 0.0  ;;  %v184_v44 = vmul.f32 0.6931472, %v241_v42 }
 0x2f8   :  { %v190_v45 = vsel %vm164_vm2, %v156_v22, %v188_v43 }
 0x2f9   :  { %192 = vst [vmem:[%s315_s5] sm:$0xff] %v190_v45  ;;  %v186_v46 = vadd.f32 %v184_v44, %v170_v32 }
 0x2fb   :  { %v189_v47 = vsel %vm187_vm3, %v186_v46, 0.0 }
 0x2fc   :  { %v191_v48 = vsel %vm164_vm2, %v159_v25, %v189_v47 }
 0x2fd   :  { %193 = vst [vmem:[%s315_s5 + $0x8] sm:$0xff] %v191_v48 }

</bundles_post_ra>
